<compile_context>
chip_gen: v7x
topology: tpu7x:2x2x1
jax: 0.10.0
libtpu: 0.0.40
codegen_flags: <defaults>
</compile_context>

<pallas_src>
import functools

import jax
import jax.numpy as jnp
from jax.experimental import pallas as pl
from jax.experimental.pallas import tpu as pltpu


def _copy_kernel(x_ref, o_ref):
    # Identity copy of one tile — the only real data movement in a
    # materialized view of a contiguous tensor.
    o_ref[...] = x_ref[...]


def _resolve_new_shape(total_elems, new_shape):
    """Resolve a single -1 the same way torch.Tensor.view does."""
    new_shape = list(new_shape)
    if -1 in new_shape:
        idx = new_shape.index(-1)
        known = 1
        for i, d in enumerate(new_shape):
            if i != idx:
                known *= d
        assert known > 0 and total_elems % known == 0, "invalid view shape"
        new_shape[idx] = total_elems // known
    prod = 1
    for d in new_shape:
        prod *= d
    assert prod == total_elems, "view shape must preserve element count"
    return tuple(new_shape)


def _default_block_bytes():
    """~2 MiB blocks on older gens (v5e: 16 MiB default scoped VMEM), ~4 MiB on v6e/v7x."""
    try:
        kind = jax.devices()[0].device_kind.lower()
    except Exception:  # pragma: no cover - defensive
        return 2 * 1024 * 1024
    if any(v in kind for v in ("v2", "v3", "v4", "v5")):
        return 2 * 1024 * 1024
    return 4 * 1024 * 1024


@functools.partial(
    jax.jit, static_argnames=("new_shape", "materialize", "lanes", "block_rows")
)
def pallas_view(x, new_shape, *, materialize=True, lanes=None, block_rows=None):
    """Equivalent of torch x.view(new_shape) for contiguous (row-major) x.

    materialize=False  -> pure metadata reshape (zero HBM traffic).
    materialize=True   -> materialized copy through a Pallas kernel.
    materialize="auto" -> Pallas copy only when the array is not tiny.
    """
    total = x.size
    out_shape = _resolve_new_shape(total, new_shape)

    if materialize == "auto":
        materialize = total >= 8 * 128
    if not materialize or total == 0:
        # Production fast path: a view is metadata only.
        return jnp.reshape(x, out_shape)

    dtype = x.dtype
    itemsize = jnp.dtype(dtype).itemsize
    sublane = max(8, 32 // itemsize)          # 8 f32 / 16 bf16 / 32 int8
    flat = x.reshape(-1)                      # row-major flatten == torch contiguous

    # Pick the widest lane count that tiles `total` exactly (no padding copy).
    lane_candidates = (lanes,) if lanes is not None else (512, 256, 128)
    chosen = next((L for L in lane_candidates if L and total % L == 0), None)

    if chosen is None:
        # No lane-dense factorization.  Tiny arrays (all shapes in
        # test_view.py): copy as one full-array block (block_shape == full
        # array dims is always legal).  Large ragged arrays: padding would
        # ~3x HBM traffic, so use the metadata reshape instead.
        # TODO(synk): large ragged arrays could use chunked HBM->HBM DMA
        # (memory_space=pl.ANY + pltpu.make_async_copy) to stay in-kernel.
        if total > (1 << 20):
            return jnp.reshape(x, out_shape)
        out = pl.pallas_call(
            _copy_kernel,
            out_shape=jax.ShapeDtypeStruct((1, total), dtype),
        )(flat.reshape(1, total))
        return out.reshape(out_shape)

    rows = total // chosen

    # Block rows: ~2-4 MiB per block (generation dependent), sublane aligned.
    auto_block = block_rows is None
    if auto_block:
        block_rows = max(sublane, _default_block_bytes() // (chosen * itemsize))
    block_rows = max(sublane, (block_rows // sublane) * sublane)
    tm = min(block_rows, rows)   # either sublane-aligned or the full row extent

    if auto_block and tm == rows and rows >= 2 * sublane:
        # v7x megacore: make sure the grid is splittable across both
        # TensorCores (harmless on single-TC chips: one extra ~0.35us step).
        tm = max(sublane, (((rows + 1) // 2) // sublane) * sublane)

    n_blocks = pl.cdiv(rows, tm)   # ragged last block handled by Pallas masking
    slab = flat.reshape(rows, chosen)

    slab_out = pl.pallas_call(
        _copy_kernel,
        out_shape=jax.ShapeDtypeStruct((rows, chosen), dtype),
        grid=(n_blocks,),
        in_specs=[pl.BlockSpec((tm, chosen), lambda i: (i, 0))],
        out_specs=pl.BlockSpec((tm, chosen), lambda i: (i, 0)),
        compiler_params=pltpu.CompilerParams(
            dimension_semantics=("parallel",)),
        cost_estimate=pl.CostEstimate(
            flops=0, transcendentals=0, bytes_accessed=2 * total * itemsize),
    )(slab)

    return slab_out.reshape(out_shape)


if __name__ == "__main__":
    key = jax.random.PRNGKey(0)

    # Representative cases from backends/arm/test/ops/test_view.py (tiny
    # shapes, incl. -1 dims) — these exercise the single-full-block path.
    cases = [
        ((100,), (1, -1, 5, 2), jnp.float32),         # rand_1d_neg
        ((10, 2, 1, 5), (1, -1, 5, 2), jnp.float32),  # rand_4d_neg
        ((1, 2, 1, 9), (3, 1, 3, 2), jnp.float32),    # rand_4d_4d_small
        ((2, 50, 2, 1), (1, 200), jnp.float32),       # rand_4d_2d
        ((2, 5, 2, 3), (1, 15, 4), jnp.float32),      # rand_4d_3d
        ((2, 3, 2, 3), (2, 3, 3, 2), jnp.float32),    # rand_4d_2_4_same
        ((10, 10), (5, 1, 5, 4), jnp.bfloat16),       # rand_4d_2_4_big (bf16)
    ]

    for i, (in_shape, new_shape, dtype) in enumerate(cases):
        k = jax.random.fold_in(key, i)
        x = jax.random.uniform(k, in_shape, dtype=jnp.float32).astype(dtype)
        y = pallas_view(x, new_shape)
        jax.block_until_ready(y)
        y_ref = jnp.reshape(x, _resolve_new_shape(x.size, new_shape))
        assert y.shape == y_ref.shape, (y.shape, y_ref.shape)
        assert jnp.array_equal(y, y_ref), "mismatch vs jnp.reshape reference"

    # Lane-dense pipelined path: total % 512 == 0, grid auto-split into 2
    # blocks of (32, 512) so both v7x TensorCores would get work.
    x = jax.random.uniform(jax.random.fold_in(key, 100), (64, 512), dtype=jnp.float32)
    y = pallas_view(x, (1, -1, 64, 2))
    jax.block_until_ready(y)
    assert jnp.array_equal(y, jnp.reshape(x, (1, 256, 64, 2)))

    # Ragged-rows path: rows=72, tm=32 -> grid of 3 with a masked edge block
    # (no jnp.pad / slice anywhere).
    x = jax.random.uniform(jax.random.fold_in(key, 101), (72, 128), dtype=jnp.float32)
    y = pallas_view(x, (2, -1, 16), lanes=128, block_rows=32)
    jax.block_until_ready(y)
    assert jnp.array_equal(y, jnp.reshape(x, (2, 288, 16)))

    # Zero-copy metadata fast path (production semantics of torch.view).
    y_fast = pallas_view(x, (2, -1, 16), materialize=False)
    jax.block_until_ready(y_fast)
    assert jnp.array_equal(y_fast, jnp.reshape(x, (2, 288, 16)))

    print("KERNEL_OK")
</pallas_src>

<mosaic_0001>
module attributes {stable_mosaic.version = 11 : i64} {
  func.func @_copy_kernel(%arg0: memref<1x100xf32, #tpu.memory_space<vmem>>, %arg1: memref<1x100xf32, #tpu.memory_space<vmem>>) attributes {dimension_semantics = [], scalar_prefetch = 0 : i64, scratch_operands = 0 : i64, tpu.core_type = #tpu.core_type<tc>} {
    %c0 = arith.constant 0 : index
    %c0_0 = arith.constant 0 : index
    %0 = vector.load %arg0[%c0, %c0_0] : memref<1x100xf32, #tpu.memory_space<vmem>>, vector<1x100xf32>
    %c0_1 = arith.constant 0 : index
    %c0_2 = arith.constant 0 : index
    %1 = vector.load %arg1[%c0_1, %c0_2] : memref<1x100xf32, #tpu.memory_space<vmem>>, vector<1x100xf32>
    tpu.vector_store %arg1[%c0_1, %c0_2], %0 {strides = array<i32>} : memref<1x100xf32, #tpu.memory_space<vmem>>, vector<1x100xf32>,
    return
  }
}

</mosaic_0001>

<bundles_post_ra>
// kernel: pallas_view.1
= control target key start
LH: loop header
LB: loop body
LE: loop exit
PB: predicated region body
PF: predicated region fallthrough
CT: control target
= control target key end

     0   :  { %vm9_vm0 = vcmask 811008   ;;  %s31_s0 = inlined_call_operand.vmem [shape: f32[1,100], index: 0, kind: input, shape index: {}]   ;;  %s32_s1 = inlined_call_operand.vmem [shape: f32[1,100], index: 1, kind: output, shape index: {}]  }
   0x1   :  { %v8_v0 = vld [vmem:[%s31_s0] sm:$0x1] }
   0x2   :  { %10 = vst.msk [vmem:[%s32_s1] sm:$0x1] %vm9_vm0, %v8_v0 }

</bundles_post_ra>
